<compile_context>
chip_gen: v5e
topology: v5e:2x2
jax: 0.10.0
libtpu: 0.0.40
codegen_flags: <defaults>
</compile_context>

<pallas_src>
import math

import jax
import jax.numpy as jnp
from jax.experimental import pallas as pl
from jax.experimental.pallas import tpu as pltpu

SD_DIM = 4                  # src(2) + dest(2)
U_DIM = 32                  # global feature width
IN_DIM = SD_DIM + U_DIM     # 36
HID_DIM = 32
OUT_DIM = 32
PACK = 4                    # edges packed per 128-lane row (4 * 32 = 128)


def _round_up(x, m):
    return ((x + m - 1) // m) * m


def _block_diag(w, pack):
    """Tile a small (r, c) weight into a (pack*r, pack*c) block-diagonal matrix."""
    r, c = w.shape
    out = jnp.zeros((pack * r, pack * c), w.dtype)
    for i in range(pack):
        out = out.at[i * r:(i + 1) * r, i * c:(i + 1) * c].set(w)
    return out


def edge_mlp_kernel(srcp_ref, dstp_ref, ids_ref, w1s_ref, w1d_ref, uw1_ref,
                    w2_ref, b2_ref, o_ref):
    """Fused gather(u,batch) + concat + Lin(36,32) + ReLU + Lin(32,32), 4 edges/row.

    srcp_ref: (t, 8)        f32   4 packed src  feature pairs per row
    dstp_ref: (t, 8)        f32   4 packed dest feature pairs per row
    ids_ref : (t, 4)        i32   graph id of each of the 4 packed edges
    w1s_ref : (8, 128)      f32   block-diag of w1[:2]   (src rows of layer 1)
    w1d_ref : (8, 128)      f32   block-diag of w1[2:4]  (dest rows of layer 1)
    uw1_ref : (4B, 128)     f32   block-diag of (u @ w1[4:] + b1)
    w2_ref  : (128, 128)    f32   block-diag of w2
    b2_ref  : (1, 128)      f32   b2 tiled 4x
    o_ref   : (t, 128)      f32   4 packed 32-wide outputs per row
    """
    srcp = srcp_ref[...]                     # (t, 8)
    dstp = dstp_ref[...]                     # (t, 8)
    ids = ids_ref[...]                       # (t, 4) int32
    t = srcp.shape[0]
    nb = uw1_ref.shape[0] // PACK            # number of graphs B

    # Packed one-hot gather matrix: column i*B + b is 1 iff packed edge slot i of
    # this row belongs to graph b.  Built with 4 lane-broadcast compares (no
    # gather, no concat).  Out-of-range ids give an all-zero row (see wrapper note).
    col = jax.lax.broadcasted_iota(jnp.int32, (t, PACK * nb), 1)
    onehot = jnp.zeros((t, PACK * nb), jnp.float32)
    for i in range(PACK):
        onehot = onehot + (col == (ids[:, i:i + 1] + i * nb)).astype(jnp.float32)

    # Layer 1 (b1 already folded into uw1): relu(sd @ w1[:4] + u[batch] @ w1[4:] + b1)
    h = (jnp.dot(srcp, w1s_ref[...], preferred_element_type=jnp.float32)
         + jnp.dot(dstp, w1d_ref[...], preferred_element_type=jnp.float32)
         + jnp.dot(onehot, uw1_ref[...], preferred_element_type=jnp.float32))
    h = jnp.maximum(h, 0.0)

    # Layer 2 (block-diagonal -> per-edge 32x32 matmul)
    y = jnp.dot(h, w2_ref[...], preferred_element_type=jnp.float32) + b2_ref[...]
    o_ref[...] = y.astype(o_ref.dtype)


def edge_decoder_forward(src, dest, edge_attr, u, batch, params, *,
                         max_tile_rows=4096):
    """Pallas implementation of EdgeDecoder.forward.

    src, dest: (E, 2) f32; edge_attr: unused (signature parity with the module);
    u: (B, 32) f32; batch: (E,) int; returns (E, 32) f32.
    """
    del edge_attr  # the reference module never touches it
    w1, b1, w2, b2 = params        # w1: (36, 32) laid out (in, out)
    E = src.shape[0]
    B = u.shape[0]
    if E == 0:
        return jnp.zeros((0, OUT_DIM), jnp.float32)

    src = src.astype(jnp.float32)
    dest = dest.astype(jnp.float32)
    batch = batch.astype(jnp.int32)

    # Hoisted u-path: (B, 32).  Gathered per-edge in-kernel via one-hot matmul.
    # NOTE: requires batch ids in [0, B) (as the PyTorch u[batch] does); an
    # out-of-range id would silently zero that edge's u (and b1) contribution.
    # TODO(synk): for B beyond a few hundred graphs, gather uw1[batch] in the
    # wrapper instead of growing the in-kernel one-hot.
    uw1 = u.astype(jnp.float32) @ w1[SD_DIM:] + b1.reshape(1, HID_DIM)

    # Tiny weights, block-diagonalized once so the kernel is 128-lane dense.
    w1s_bd = _block_diag(w1[0:2], PACK)                        # (8,   128)
    w1d_bd = _block_diag(w1[2:4], PACK)                        # (8,   128)
    uw1_bd = _block_diag(uw1, PACK)                            # (4B,  128)
    w2_bd = _block_diag(w2, PACK)                              # (128, 128)
    b2_bd = jnp.tile(b2.reshape(1, OUT_DIM), (1, PACK))        # (1,   128)

    # Pack 4 edges per row.  The reshapes below are pure row-major relabelings
    # (free).  Only E % 4 != 0 needs a <=3-row pad (+ final slice).
    Ep = _round_up(E, PACK)
    if Ep != E:
        pad = Ep - E
        src = jnp.pad(src, ((0, pad), (0, 0)))
        dest = jnp.pad(dest, ((0, pad), (0, 0)))
        batch = jnp.pad(batch, (0, pad))       # padded edges -> graph 0 (B >= 1)
    E4 = Ep // PACK
    srcp = src.reshape(E4, PACK * 2)           # (E4, 8)
    dstp = dest.reshape(E4, PACK * 2)          # (E4, 8)
    idsp = batch.reshape(E4, PACK)             # (E4, 4)

    # Tile selection: one step when everything fits (no pointless splits on
    # single-TC chips); otherwise big tiles split into >=4 roughly equal
    # "parallel" steps so v7x's two TensorCores stay balanced.
    if E4 <= max_tile_rows:
        te4 = _round_up(E4, 8)
    else:
        te4 = min(max_tile_rows, _round_up(pl.cdiv(E4, 4), 8))
    grid = (pl.cdiv(E4, te4),)                 # ragged last block handled by Pallas

    out = pl.pallas_call(
        edge_mlp_kernel,
        out_shape=jax.ShapeDtypeStruct((E4, PACK * OUT_DIM), jnp.float32),
        grid_spec=pltpu.PrefetchScalarGridSpec(
            num_scalar_prefetch=0,
            grid=grid,
            in_specs=[
                pl.BlockSpec((te4, PACK * 2), lambda i: (i, 0)),           # srcp
                pl.BlockSpec((te4, PACK * 2), lambda i: (i, 0)),           # dstp
                pl.BlockSpec((te4, PACK), lambda i: (i, 0)),               # ids
                pl.BlockSpec((PACK * 2, PACK * HID_DIM), lambda i: (0, 0)),    # w1 src
                pl.BlockSpec((PACK * 2, PACK * HID_DIM), lambda i: (0, 0)),    # w1 dest
                pl.BlockSpec((PACK * B, PACK * HID_DIM), lambda i: (0, 0)),    # uw1
                pl.BlockSpec((PACK * HID_DIM, PACK * OUT_DIM), lambda i: (0, 0)),  # w2
                pl.BlockSpec((1, PACK * OUT_DIM), lambda i: (0, 0)),           # b2
            ],
            out_specs=pl.BlockSpec((te4, PACK * OUT_DIM), lambda i: (i, 0)),
        ),
        compiler_params=pltpu.CompilerParams(
            dimension_semantics=("parallel",),
            vmem_limit_bytes=48 * 1024 * 1024,   # big tiles exceed default scoped VMEM
        ),
    )(srcp, dstp, idsp, w1s_bd, w1d_bd, uw1_bd, w2_bd, b2_bd)

    # Free reshape back to one edge per row (identical row-major linear layout).
    out = out.reshape(Ep, OUT_DIM)
    if Ep != E:
        out = out[:E]
    return out


def init_params(key):
    """Deterministic init mimicking torch.nn.Linear (uniform +/- 1/sqrt(fan_in)).

    Weights are stored (in, out); real PyTorch nn.Linear weights ((out, in)) must
    be transposed before use.
    """
    k1, k2, k3, k4 = jax.random.split(key, 4)
    bound1 = 1.0 / math.sqrt(IN_DIM)
    bound2 = 1.0 / math.sqrt(HID_DIM)
    w1 = jax.random.uniform(k1, (IN_DIM, HID_DIM), jnp.float32, -bound1, bound1)
    b1 = jax.random.uniform(k2, (1, HID_DIM), jnp.float32, -bound1, bound1)
    w2 = jax.random.uniform(k3, (HID_DIM, OUT_DIM), jnp.float32, -bound2, bound2)
    b2 = jax.random.uniform(k4, (1, OUT_DIM), jnp.float32, -bound2, bound2)
    return w1, b1, w2, b2


def reference_forward(src, dest, u, batch, params):
    w1, b1, w2, b2 = params
    x = jnp.concatenate([src, dest, u[batch]], axis=1)
    h = jnp.maximum(x @ w1 + b1, 0.0)
    return h @ w2 + b2


if __name__ == "__main__":
    key = jax.random.PRNGKey(0)
    k_src, k_dst, k_u, k_batch, k_param = jax.random.split(key, 5)

    E = 200          # exercises a ragged last block (E4 = 50 inside a 56-row tile)
    B = 2            # number of graphs in the batch
    src = jax.random.normal(k_src, (E, 2), jnp.float32)
    dest = jax.random.normal(k_dst, (E, 2), jnp.float32)
    edge_attr = jnp.zeros((E, 4), jnp.float32)   # unused by the module
    u = jax.random.normal(k_u, (B, U_DIM), jnp.float32)
    batch = jax.random.randint(k_batch, (E,), 0, B, jnp.int32)

    params = init_params(k_param)

    out = edge_decoder_forward(src, dest, edge_attr, u, batch, params)
    out = jax.block_until_ready(out)

    ref = reference_forward(src, dest, u, batch, params)
    assert out.shape == (E, OUT_DIM)
    assert jnp.allclose(out, ref, atol=1e-4, rtol=1e-4), "mismatch vs reference"

    print("KERNEL_OK")
</pallas_src>

<mosaic_0001>
module attributes {stable_mosaic.version = 11 : i64} {
  func.func @edge_mlp_kernel(%arg0: i32, %arg1: memref<56x8xf32, #tpu.memory_space<vmem>>, %arg2: memref<56x8xf32, #tpu.memory_space<vmem>>, %arg3: memref<56x4xi32, #tpu.memory_space<vmem>>, %arg4: memref<8x128xf32, #tpu.memory_space<vmem>>, %arg5: memref<8x128xf32, #tpu.memory_space<vmem>>, %arg6: memref<8x128xf32, #tpu.memory_space<vmem>>, %arg7: memref<128x128xf32, #tpu.memory_space<vmem>>, %arg8: memref<1x128xf32, #tpu.memory_space<vmem>>, %arg9: memref<56x128xf32, #tpu.memory_space<vmem>>) attributes {dimension_semantics = [#tpu.dimension_semantics<parallel>], iteration_bounds = array<i64: 1>, scalar_prefetch = 0 : i64, scratch_operands = 0 : i64, tpu.core_type = #tpu.core_type<tc>, window_params = [{transform_indices = @transform_0, window_bounds = array<i64: 56, 8>}, {transform_indices = @transform_1, window_bounds = array<i64: 56, 8>}, {transform_indices = @transform_2, window_bounds = array<i64: 56, 4>}, {pipeline_mode = #tpu.pipeline_mode<synchronous>, transform_indices = @transform_3, window_bounds = array<i64: 8, 128>}, {pipeline_mode = #tpu.pipeline_mode<synchronous>, transform_indices = @transform_4, window_bounds = array<i64: 8, 128>}, {pipeline_mode = #tpu.pipeline_mode<synchronous>, transform_indices = @transform_5, window_bounds = array<i64: 8, 128>}, {pipeline_mode = #tpu.pipeline_mode<synchronous>, transform_indices = @transform_6, window_bounds = array<i64: 128, 128>}, {pipeline_mode = #tpu.pipeline_mode<synchronous>, transform_indices = @transform_7, window_bounds = array<i64: 1, 128>}, {transform_indices = @transform_8, window_bounds = array<i64: 56, 128>}]} {
    %c0 = arith.constant 0 : index
    %c0_0 = arith.constant 0 : index
    %0 = vector.load %arg1[%c0, %c0_0] : memref<56x8xf32, #tpu.memory_space<vmem>>, vector<56x8xf32>
    %c0_1 = arith.constant 0 : index
    %c0_2 = arith.constant 0 : index
    %1 = vector.load %arg2[%c0_1, %c0_2] : memref<56x8xf32, #tpu.memory_space<vmem>>, vector<56x8xf32>
    %c0_3 = arith.constant 0 : index
    %c0_4 = arith.constant 0 : index
    %2 = vector.load %arg3[%c0_3, %c0_4] : memref<56x4xi32, #tpu.memory_space<vmem>>, vector<56x4xi32>
    %3 = tpu.iota {dimensions = array<i32: 1>} : vector<56x8xi32>
    %cst = arith.constant 0.000000e+00 : f32
    %4 = vector.broadcast %cst : f32 to vector<56x8xf32>
    %5 = vector.extract_strided_slice %2 {offsets = [0, 0], sizes = [56, 1], strides = [1, 1]} : vector<56x4xi32> to vector<56x1xi32>
    %c0_i32 = arith.constant 0 : i32
    %6 = vector.broadcast %c0_i32 : i32 to vector<56x1xi32>
    %7 = arith.addi %5, %6 : vector<56x1xi32>
    %8 = vector.broadcast %7 : vector<56x1xi32> to vector<56x8xi32>
    %9 = arith.cmpi eq, %3, %8 : vector<56x8xi32>
    %10 = arith.extui %9 : vector<56x8xi1> to vector<56x8xi32>
    %11 = arith.sitofp %10 : vector<56x8xi32> to vector<56x8xf32>
    %12 = arith.addf %4, %11 : vector<56x8xf32>
    %13 = vector.extract_strided_slice %2 {offsets = [0, 1], sizes = [56, 1], strides = [1, 1]} : vector<56x4xi32> to vector<56x1xi32>
    %c2_i32 = arith.constant 2 : i32
    %14 = vector.broadcast %c2_i32 : i32 to vector<56x1xi32>
    %15 = arith.addi %13, %14 : vector<56x1xi32>
    %16 = vector.broadcast %15 : vector<56x1xi32> to vector<56x8xi32>
    %17 = arith.cmpi eq, %3, %16 : vector<56x8xi32>
    %18 = arith.extui %17 : vector<56x8xi1> to vector<56x8xi32>
    %19 = arith.sitofp %18 : vector<56x8xi32> to vector<56x8xf32>
    %20 = arith.addf %12, %19 : vector<56x8xf32>
    %21 = vector.extract_strided_slice %2 {offsets = [0, 2], sizes = [56, 1], strides = [1, 1]} : vector<56x4xi32> to vector<56x1xi32>
    %c4_i32 = arith.constant 4 : i32
    %22 = vector.broadcast %c4_i32 : i32 to vector<56x1xi32>
    %23 = arith.addi %21, %22 : vector<56x1xi32>
    %24 = vector.broadcast %23 : vector<56x1xi32> to vector<56x8xi32>
    %25 = arith.cmpi eq, %3, %24 : vector<56x8xi32>
    %26 = arith.extui %25 : vector<56x8xi1> to vector<56x8xi32>
    %27 = arith.sitofp %26 : vector<56x8xi32> to vector<56x8xf32>
    %28 = arith.addf %20, %27 : vector<56x8xf32>
    %29 = vector.extract_strided_slice %2 {offsets = [0, 3], sizes = [56, 1], strides = [1, 1]} : vector<56x4xi32> to vector<56x1xi32>
    %c6_i32 = arith.constant 6 : i32
    %30 = vector.broadcast %c6_i32 : i32 to vector<56x1xi32>
    %31 = arith.addi %29, %30 : vector<56x1xi32>
    %32 = vector.broadcast %31 : vector<56x1xi32> to vector<56x8xi32>
    %33 = arith.cmpi eq, %3, %32 : vector<56x8xi32>
    %34 = arith.extui %33 : vector<56x8xi1> to vector<56x8xi32>
    %35 = arith.sitofp %34 : vector<56x8xi32> to vector<56x8xf32>
    %36 = arith.addf %28, %35 : vector<56x8xf32>
    %c0_5 = arith.constant 0 : index
    %c0_6 = arith.constant 0 : index
    %37 = vector.load %arg4[%c0_5, %c0_6] : memref<8x128xf32, #tpu.memory_space<vmem>>, vector<8x128xf32>
    %cst_7 = arith.constant dense<0.000000e+00> : vector<56x128xf32>
    %38 = tpu.matmul %0, %37, %cst_7 {dimension_numbers = #tpu.dot_dimension_numbers<[1], [0], [0], [1], [0, 0, 1, 1], [], []>} : vector<56x8xf32>, vector<8x128xf32>, vector<56x128xf32> -> vector<56x128xf32>
    %c0_8 = arith.constant 0 : index
    %c0_9 = arith.constant 0 : index
    %39 = vector.load %arg5[%c0_8, %c0_9] : memref<8x128xf32, #tpu.memory_space<vmem>>, vector<8x128xf32>
    %cst_10 = arith.constant dense<0.000000e+00> : vector<56x128xf32>
    %40 = tpu.matmul %1, %39, %cst_10 {dimension_numbers = #tpu.dot_dimension_numbers<[1], [0], [0], [1], [0, 0, 1, 1], [], []>} : vector<56x8xf32>, vector<8x128xf32>, vector<56x128xf32> -> vector<56x128xf32>
    %41 = arith.addf %38, %40 : vector<56x128xf32>
    %c0_11 = arith.constant 0 : index
    %c0_12 = arith.constant 0 : index
    %42 = vector.load %arg6[%c0_11, %c0_12] : memref<8x128xf32, #tpu.memory_space<vmem>>, vector<8x128xf32>
    %cst_13 = arith.constant dense<0.000000e+00> : vector<56x128xf32>
    %43 = tpu.matmul %36, %42, %cst_13 {dimension_numbers = #tpu.dot_dimension_numbers<[1], [0], [0], [1], [0, 0, 1, 1], [], []>} : vector<56x8xf32>, vector<8x128xf32>, vector<56x128xf32> -> vector<56x128xf32>
    %44 = arith.addf %41, %43 : vector<56x128xf32>
    %cst_14 = arith.constant 0.000000e+00 : f32
    %45 = vector.broadcast %cst_14 : f32 to vector<56x128xf32>
    %46 = arith.maximumf %44, %45 : vector<56x128xf32>
    %c0_15 = arith.constant 0 : index
    %c0_16 = arith.constant 0 : index
    %47 = vector.load %arg7[%c0_15, %c0_16] : memref<128x128xf32, #tpu.memory_space<vmem>>, vector<128x128xf32>
    %cst_17 = arith.constant dense<0.000000e+00> : vector<56x128xf32>
    %48 = tpu.matmul %46, %47, %cst_17 {dimension_numbers = #tpu.dot_dimension_numbers<[1], [0], [0], [1], [0, 0, 1, 1], [], []>} : vector<56x128xf32>, vector<128x128xf32>, vector<56x128xf32> -> vector<56x128xf32>
    %c0_18 = arith.constant 0 : index
    %c0_19 = arith.constant 0 : index
    %49 = vector.load %arg8[%c0_18, %c0_19] : memref<1x128xf32, #tpu.memory_space<vmem>>, vector<1x128xf32>
    %50 = vector.broadcast %49 : vector<1x128xf32> to vector<56x128xf32>
    %51 = arith.addf %48, %50 : vector<56x128xf32>
    %c0_20 = arith.constant 0 : index
    %c0_21 = arith.constant 0 : index
    %52 = vector.load %arg9[%c0_20, %c0_21] : memref<56x128xf32, #tpu.memory_space<vmem>>, vector<56x128xf32>
    tpu.vector_store %arg9[%c0_20, %c0_21], %51 {strides = array<i32>} : memref<56x128xf32, #tpu.memory_space<vmem>>, vector<56x128xf32>,
    return
  }
  func.func @transform_0(%arg0: i32) -> (i32, i32) {
    %c0_i32 = arith.constant 0 : i32
    %c0_i32_0 = arith.constant 0 : i32
    return %arg0, %c0_i32 : i32, i32
  }
  func.func @transform_1(%arg0: i32) -> (i32, i32) {
    %c0_i32 = arith.constant 0 : i32
    %c0_i32_0 = arith.constant 0 : i32
    return %arg0, %c0_i32 : i32, i32
  }
  func.func @transform_2(%arg0: i32) -> (i32, i32) {
    %c0_i32 = arith.constant 0 : i32
    %c0_i32_0 = arith.constant 0 : i32
    return %arg0, %c0_i32 : i32, i32
  }
  func.func @transform_3(%arg0: i32) -> (i32, i32) {
    %c0_i32 = arith.constant 0 : i32
    %c0_i32_0 = arith.constant 0 : i32
    %c0_i32_1 = arith.constant 0 : i32
    return %c0_i32, %c0_i32_0 : i32, i32
  }
  func.func @transform_4(%arg0: i32) -> (i32, i32) {
    %c0_i32 = arith.constant 0 : i32
    %c0_i32_0 = arith.constant 0 : i32
    %c0_i32_1 = arith.constant 0 : i32
    return %c0_i32, %c0_i32_0 : i32, i32
  }
  func.func @transform_5(%arg0: i32) -> (i32, i32) {
    %c0_i32 = arith.constant 0 : i32
    %c0_i32_0 = arith.constant 0 : i32
    %c0_i32_1 = arith.constant 0 : i32
    return %c0_i32, %c0_i32_0 : i32, i32
  }
  func.func @transform_6(%arg0: i32) -> (i32, i32) {
    %c0_i32 = arith.constant 0 : i32
    %c0_i32_0 = arith.constant 0 : i32
    %c0_i32_1 = arith.constant 0 : i32
    return %c0_i32, %c0_i32_0 : i32, i32
  }
  func.func @transform_7(%arg0: i32) -> (i32, i32) {
    %c0_i32 = arith.constant 0 : i32
    %c0_i32_0 = arith.constant 0 : i32
    %c0_i32_1 = arith.constant 0 : i32
    return %c0_i32, %c0_i32_0 : i32, i32
  }
  func.func @transform_8(%arg0: i32) -> (i32, i32) {
    %c0_i32 = arith.constant 0 : i32
    %c0_i32_0 = arith.constant 0 : i32
    return %arg0, %c0_i32 : i32, i32
  }
}

</mosaic_0001>

<bundles_post_ra>
// kernel: tpu_custom_call.1
= control target key start
LH: loop header
LB: loop body
LE: loop exit
PB: predicated region body
PF: predicated region fallthrough
CT: control target
= control target key end

     0   :  { %13 = vsyncpa [#allocation3], 0  ;;  %s967_s0 = inlined_call_operand.vmem [shape: f32[50,8], index: 0, kind: input, shape index: {}]   ;;  %s968_s1 = inlined_call_operand.vmem [shape: f32[50,8], index: 1, kind: input, shape index: {}]   ;;  %s969_s2 = inlined_call_operand.vmem [shape: s32[50,4], index: 2, kind: input, shape index: {}]   ;;  %s970_s3 = inlined_call_operand.vmem [shape: f32[8,128], index: 3, kind: input, shape index: {}]   ;;  %s971_s4 = inlined_call_operand.vmem [shape: f32[8,128], index: 4, kind: input, shape index: {}]   ;;  %s972_s5 = inlined_call_operand.vmem [shape: f32[8,128], index: 5, kind: input, shape index: {}]   ;;  %s973_s6 = inlined_call_operand.hbm [shape: f32[128,128], index: 6, kind: input, shape index: {}]   ;;  %s974_s7 = inlined_call_operand.vmem [shape: f32[1,128], index: 7, kind: input, shape index: {}]   ;;  %s975_s8 = inlined_call_operand.hbm [shape: f32[50,128], index: 8, kind: output, shape index: {}]  }
   0x1   :  { %14 = vsyncpa [#allocation4], 0  ;;  %s31_s29 = sshll.u32 %s973_s6, 4  ;;  %s720_s30 = smov [#allocation2]   ;;  %s32_s29 = int_to_ptr.hbm [resolvable:$true] %s31_s29 }
   0x2   :  { %s33_s9 = sshll.u32 %s720_s30, 4  ;;  %s721_s10 = smov 128   ;;  %s34_s9 = int_to_ptr.vmem [resolvable:$true] %s33_s9 }
   0x3   :  { %s722_s11 = smov 8  }
   0x4   :  { %39 = dma.hbm_to_vmem [thread:$0]  %s32_s29, 2048, %s34_s9, [#allocation3], %s721_s10, %s721_s10, %s722_s11  }
   0x5   :  { %716 = dma.done.wait [#allocation3], 2048  }
   0x6   :  { %717 = vsyncadd [#allocation3], 4294965248  ;;  %v723_v0 = vmov 2   ;;  %v724_v1 = vmov 1   ;;  %v725_v2 = vmov 0   ;;  %v60_v3 = vld [vmem:[%s969_s2] sm:$0xff]  ;;  %v67_v44 = vlaneseq }
   0x7   :  { %643 = vset.pattern.permute.xlu1 %v723_v0  ;;  %640 = vset.pattern.permute.xlu0 %v724_v1  ;;  %v61_v4 = vld [vmem:[%s969_s2 + $0x8] sm:$0xff]  ;;  %v174_v5 = vadd.s32 4, %v60_v3  ;;  %v118_v6 = vadd.s32 2, %v60_v3  ;;  %v230_v8 = vadd.s32 6, %v60_v3  ;;  %v726_v9 = vmov 3   ;;  %v62_v12 = vld [vmem:[%s969_s2 + $0x10] sm:$0xff] }
   0x8   :  { %642 = vset.pattern.permute.xlu2 %v725_v2  ;;  %v119_v7 = vadd.s32 2, %v61_v4  ;;  %v231_v10 = vadd.s32 6, %v61_v4  ;;  %v175_v11 = vadd.s32 4, %v61_v4  ;;  %v63_v13 = vld [vmem:[%s969_s2 + $0x18] sm:$0xff]  ;;  %v176_v14 = vadd.s32 4, %v62_v12  ;;  %v64_v17 = vld [vmem:[%s969_s2 + $0x20] sm:$0xff] }
   0x9   :  { %73 = vperm.xlu2 %642, %v61_v4   ;;  %182 = vperm.xlu1 %643, %v174_v5   ;;  %v121_v15 = vadd.s32 2, %v63_v13  ;;  %v120_v16 = vadd.s32 2, %v62_v12  ;;  %v178_v18 = vadd.s32 4, %v64_v17  ;;  %v232_v19 = vadd.s32 6, %v62_v12  ;;  %v65_v21 = vld [vmem:[%s969_s2 + $0x28] sm:$0xff]  ;;  %v287_v25 = vld [vmem:[%s971_s4] sm:$0xff] }
   0xa   :  { %126 = vperm.xlu0 %640, %v118_v6   ;;  %v233_v20 = vadd.s32 6, %v63_v13  ;;  %v235_v22 = vadd.s32 6, %v65_v21  ;;  %v177_v23 = vadd.s32 4, %v63_v13  ;;  %v122_v24 = vadd.s32 2, %v64_v17  ;;  %v59_v26 = vld [vmem:[%s968_s1 + $0x30] sm:$0xff]  ;;  %v286_v27 = vld [vmem:[%s970_s3] sm:$0xff]  ;;  %614 = vmatpush.msra.mxu1 %v287_v25 }
   0xb   :  { %vm288_vm0 = vcmask 64512   ;;  %v234_v28 = vadd.s32 6, %v64_v17  ;;  %325 = vmatpush.msra.mxu0 %v287_v25  ;;  %v46_v29 = vld [vmem:[%s967_s0] sm:$0xff]  ;;  %v179_v30 = vadd.s32 4, %v65_v21  ;;  %v123_v31 = vadd.s32 2, %v65_v21  ;;  %v66_v32 = vld [vmem:[%s969_s2 + $0x30] sm:$0xff] }
   0xc   :  { %599 = vmatmul.msk.f32.vlgmr.msra.gmra.mxu1 %vm288_vm0, %v59_v26  ;;  %v124_v33 = vadd.s32 2, %v66_v32  ;;  %v236_v34 = vadd.s32 6, %v66_v32  ;;  %v47_v35 = vld [vmem:[%s967_s0 + $0x8] sm:$0xff]  ;;  %v180_v36 = vadd.s32 4, %v66_v32  ;;  %v48_v37 = vld [vmem:[%s967_s0 + $0x10] sm:$0xff]  ;;  %v407_v38 = vld [vmem:[%s972_s5] sm:$0xff] }
   0xd   :  { %384 = vmatpush.msrb.mxu1 %v286_v27  ;;  %444 = vmatpush.msra.mxu2 %v407_v38  ;;  %v49_v39 = vld [vmem:[%s967_s0 + $0x18] sm:$0xff]  ;;  %v53_v40 = vld [vmem:[%s968_s1] sm:$0xff]  ;;  %v54_v43 = vld [vmem:[%s968_s1 + $0x8] sm:$0xff]  ;;  %v869_v48 = vand.u32 127, %v67_v44  ;;  %v727_v50 = vmov 0.0   ;;  %s728_s6 = smov [#allocation5]  }
   0xe   :  { %593 = vmatmul.msk.f32.vlgmr.msra.gmra.mxu0 %vm288_vm0, %v53_v40  ;;  %v50_v42 = vld [vmem:[%s967_s0 + $0x20] sm:$0xff]  ;;  %v51_v49 = vld [vmem:[%s967_s0 + $0x28] sm:$0xff]  ;;  %v55_v57 = vld [vmem:[%s968_s1 + $0x10] sm:$0xff]  ;;  %s552_s13 = sshll.u32 %s975_s8, 4  ;;  %s553_s13 = int_to_ptr.hbm [resolvable:$true] %s552_s13 }
   0xf   :  { %v52_v58 = vld [vmem:[%s967_s0 + $0x30] sm:$0xff] }
  0x10   :  { %v495_v44 = vld [vmem:[#allocation2 + $0x70] sm:$0xff] }
  0x11   :  { %645 = vset.pattern.permute.xlu2 %v724_v1  ;;  %644 = vset.pattern.permute.xlu1 %v726_v9 }
  0x12   :  { %129 = vperm.xlu2 %645, %v119_v7   ;;  %641 = vset.pattern.permute.xlu0 %v725_v2 }
  0x13   :  { %238 = vperm.xlu1 %644, %v230_v8   ;;  %70 = vperm.xlu0 %641, %v60_v3   ;;  %v56_v8 = vld [vmem:[%s968_s1 + $0x18] sm:$0xff] }
  0x14   :  { %600 = vmatmul.msk.f32.vlgmr.msrb.gmra.mxu1 %vm288_vm0, %v46_v29 }
  0x16   :  { %594 = vmatmul.msk.f32.gmra.mxu0 %vm288_vm0, %v54_v43  ;;  %v496_v43 = vld [vmem:[#allocation2 + $0x78] sm:$0xff] }
  0x17   :  { %501 = vmatpush.msrb.mxu0 %v496_v43  ;;  %615 = vmatpush.msra.mxu3 %v496_v43 }
  0x19   :  { %502 = vmatpush.msrb.mxu0 %v495_v44  ;;  %616 = vmatpush.msra.mxu3 %v495_v44 }
  0x1a   :  { %647 = vset.pattern.permute.xlu2 %v726_v9 }
  0x1b   :  { %241 = vperm.xlu2 %647, %v231_v10   ;;  %646 = vset.pattern.permute.xlu1 %v723_v0 }
  0x1c   :  { %76 = vperm.xlu0 %641, %v62_v12   ;;  %185 = vperm.xlu1 %646, %v175_v11  }
  0x1d   :  { %601 = vmatmul.msk.f32.gmra.mxu1 %vm288_vm0, %v47_v35 }
  0x1e   :  { %595 = vmatmul.msk.f32.gmra.mxu0 %vm288_vm0, %v55_v57 }
  0x23   :  { %649 = vset.pattern.permute.xlu2 %v723_v0 }
  0x24   :  { %652 = vset.pattern.permute.xlu0 %v724_v1  ;;  %188 = vperm.xlu2 %649, %v176_v14  }
  0x25   :  { %648 = vset.pattern.permute.xlu1 %v724_v1  ;;  %135 = vperm.xlu0 %652, %v121_v15  }
  0x26   :  { %132 = vperm.xlu1 %648, %v120_v16   ;;  %602 = vmatmul.msk.f32.gmra.mxu1 %vm288_vm0, %v48_v37 }
  0x27   :  { %596 = vmatmul.msk.f32.gmra.mxu0 %vm288_vm0, %v56_v8 }
  0x2c   :  { %651 = vset.pattern.permute.xlu2 %v725_v2 }
  0x2d   :  { %657 = vset.pattern.permute.xlu0 %v723_v0  ;;  %79 = vperm.xlu2 %651, %v63_v13  }
  0x2e   :  { %650 = vset.pattern.permute.xlu1 %v726_v9  ;;  %194 = vperm.xlu0 %657, %v178_v18  }
  0x2f   :  { %244 = vperm.xlu1 %650, %v232_v19   ;;  %603 = vmatmul.msk.f32.gmra.mxu1 %vm288_vm0, %v49_v39 }
  0x35   :  { %654 = vset.pattern.permute.xlu2 %v726_v9 }
  0x36   :  { %247 = vperm.xlu2 %654, %v233_v20   ;;  %662 = vset.pattern.permute.xlu0 %v726_v9 }
  0x37   :  { %653 = vset.pattern.permute.xlu1 %v723_v0  ;;  %253 = vperm.xlu0 %662, %v235_v22  }
  0x38   :  { %191 = vperm.xlu1 %653, %v177_v23   ;;  %604 = vmatmul.msk.f32.gmra.mxu1 %vm288_vm0, %v50_v42 }
  0x3e   :  { %656 = vset.pattern.permute.xlu2 %v724_v1 }
  0x3f   :  { %138 = vperm.xlu2 %656, %v122_v24  }
  0x40   :  { %655 = vset.pattern.permute.xlu1 %v725_v2  ;;  %605 = vmatmul.msk.f32.gmra.mxu1 %vm288_vm0, %v51_v49  ;;  %v493_v49 = vld [vmem:[#allocation2 + $0x60] sm:$0xff] }
  0x41   :  { %82 = vperm.xlu1 %655, %v64_v17  }
  0x47   :  { %659 = vset.pattern.permute.xlu2 %v725_v2 }
  0x48   :  { %85 = vperm.xlu2 %659, %v65_v21   ;;  %606 = vmatmul.msk.f32.gmra.mxu1 %vm288_vm0, %v52_v58  ;;  %v57_v21 = vld [vmem:[%s968_s1 + $0x20] sm:$0xff] }
  0x49   :  { %658 = vset.pattern.permute.xlu1 %v726_v9  ;;  %597 = vmatmul.msk.f32.gmra.mxu0 %vm288_vm0, %v57_v21 }
  0x4a   :  { %250 = vperm.xlu1 %658, %v234_v28  }
  0x50   :  { %661 = vset.pattern.permute.xlu2 %v723_v0 }
  0x51   :  { %197 = vperm.xlu2 %661, %v179_v30  }
  0x52   :  { %660 = vset.pattern.permute.xlu1 %v724_v1 }
  0x53   :  { %141 = vperm.xlu1 %660, %v123_v31  }
  0x59   :  { %664 = vset.pattern.permute.xlu2 %v724_v1 }
  0x5a   :  { %144 = vperm.xlu2 %664, %v124_v33  }
  0x5b   :  { %663 = vset.pattern.permute.xlu1 %v725_v2 }
  0x5c   :  { %88 = vperm.xlu1 %663, %v66_v32   ;;  %v58_v32 = vld [vmem:[%s968_s1 + $0x28] sm:$0xff] }
  0x5d   :  { %598 = vmatmul.msk.f32.gmra.mxu0 %vm288_vm0, %v58_v32 }
  0x62   :  { %666 = vset.pattern.permute.xlu2 %v726_v9 }
  0x63   :  { %256 = vperm.xlu2 %666, %v236_v34   ;;  %v74_v41 = vpop.permute.xlu2 %73 }
  0x64   :  { %665 = vset.pattern.permute.xlu1 %v723_v0  ;;  %vm91_vm5 = vcmp.eq.s32.totalorder %v869_v48, %v74_v41 }
  0x65   :  { %200 = vperm.xlu1 %665, %v180_v36   ;;  %v566_v62 = vsel %vm91_vm5, 1.0, %v727_v50 }
  0x6c   :  { %v130_v47 = vpop.permute.xlu2 %129 }
  0x6d   :  { %vm147_vm6 = vcmp.eq.s32.totalorder %v869_v48, %v130_v47 }
  0x6e   :  { %v573_v63 = vsel %vm147_vm6, 1.0, %v727_v50 }
  0x6f   :  { %v168_v2 = vadd.f32 %v573_v63, %v566_v62  ;;  %v489_v62 = vld [vmem:[#allocation2 + $0x40] sm:$0xff] }
  0x75   :  { %v242_v54 = vpop.permute.xlu2 %241 }
  0x76   :  { %vm259_vm7 = vcmp.eq.s32.totalorder %v869_v48, %v242_v54  ;;  %v491_v54 = vld [vmem:[#allocation2 + $0x50] sm:$0xff] }
  0x77   :  { %v587_v4 = vsel %vm259_vm7, 1.0, %v727_v50 }
  0x7b   :  { %v183_v45 = vpop.permute.xlu1 %182 }
  0x7c   :  { %v127_v46 = vpop.permute.xlu0 %126  ;;  %vm202_vm2 = vcmp.eq.s32.totalorder %v869_v48, %v183_v45 }
  0x7d   :  { %vm146_vm1 = vcmp.eq.s32.totalorder %v869_v48, %v127_v46  ;;  %v579_v59 = vsel %vm202_vm2, 1.0, %v727_v50  ;;  %v494_v46 = vld [vmem:[#allocation2 + $0x68] sm:$0xff] }
  0x7e   :  { %v572_v51 = vsel %vm146_vm1, 1.0, %v727_v50  ;;  %v189_v5 = vpop.permute.xlu2 %188  ;;  %503 = vmatpush.msrb.mxu0 %v494_v46  ;;  %617 = vmatpush.msra.mxu3 %v494_v46 }
  0x7f   :  { %vm204_vm11 = vcmp.eq.s32.totalorder %v869_v48, %v189_v5  ;;  %v485_v5 = vld [vmem:[#allocation2 + $0x20] sm:$0xff] }
  0x80   :  { %v581_v15 = vsel %vm204_vm11, 1.0, %v727_v50  ;;  %504 = vmatpush.msrb.mxu0 %v493_v49  ;;  %618 = vmatpush.msra.mxu3 %v493_v49 }
  0x85   :  { %v239_v52 = vpop.permute.xlu1 %238  ;;  %v71_v53 = vpop.permute.xlu0 %70 }
  0x86   :  { %vm90_vm3 = vcmp.eq.s32.totalorder %v869_v48, %v71_v53  ;;  %vm258_vm4 = vcmp.eq.s32.totalorder %v869_v48, %v239_v52  ;;  %v492_v52 = vld [vmem:[#allocation2 + $0x58] sm:$0xff] }
  0x87   :  { %v565_v55 = vsel %vm90_vm3, 1.0, %v727_v50  ;;  %v586_v61 = vsel %vm258_vm4, 1.0, %v727_v50  ;;  %v80_v13 = vpop.permute.xlu2 %79  ;;  %505 = vmatpush.msrb.mxu0 %v492_v52  ;;  %619 = vmatpush.msra.mxu3 %v492_v52 }
  0x88   :  { %v167_v56 = vadd.f32 %v572_v51, %v565_v55  ;;  %vm93_vm13 = vcmp.eq.s32.totalorder %v869_v48, %v80_v13 }
  0x89   :  { %v568_v23 = vsel %vm93_vm13, 1.0, %v727_v50  ;;  %506 = vmatpush.msrb.mxu0 %v491_v54  ;;  %620 = vmatpush.msra.mxu3 %v491_v54 }
  0x8a   :  { %v223_v60 = vadd.f32 %v579_v59, %v167_v56  ;;  %v490_v59 = vld [vmem:[#allocation2 + $0x48] sm:$0xff] }
  0x8b   :  { %507 = vmatpush.msrb.mxu0 %v490_v59  ;;  %621 = vmatpush.msra.mxu3 %v490_v59 }
  0x8c   :  { %v279_v0 = vadd.f32 %v586_v61, %v223_v60 }
  0x8d   :  { %508 = vmatpush.msrb.mxu0 %v489_v62  ;;  %622 = vmatpush.msra.mxu3 %v489_v62 }
  0x8e   :  { %v186_v1 = vpop.permute.xlu1 %185  ;;  %607 = vmatmul.msk.f32.vlgmr.msra.gmra.mxu2 %vm288_vm0, %v279_v0  ;;  %v77_v9 = vpop.permute.xlu0 %76 }
  0x8f   :  { %vm203_vm8 = vcmp.eq.s32.totalorder %v869_v48, %v186_v1  ;;  %vm92_vm9 = vcmp.eq.s32.totalorder %v869_v48, %v77_v9  ;;  %v488_v1 = vld [vmem:[#allocation2 + $0x38] sm:$0xff] }
  0x90   :  { %v580_v3 = vsel %vm203_vm8, 1.0, %v727_v50  ;;  %v567_v12 = vsel %vm92_vm9, 1.0, %v727_v50  ;;  %v248_v22 = vpop.permute.xlu2 %247  ;;  %509 = vmatpush.msrb.mxu0 %v488_v1  ;;  %623 = vmatpush.msra.mxu3 %v488_v1 }
  0x91   :  { %v224_v6 = vadd.f32 %v580_v3, %v168_v2  ;;  %vm261_vm15 = vcmp.eq.s32.totalorder %v869_v48, %v248_v22  ;;  %v487_v3 = vld [vmem:[#allocation2 + $0x30] sm:$0xff] }
  0x92   :  { %v589_v28 = vsel %vm261_vm15, 1.0, %v727_v50  ;;  %510 = vmatpush.msrb.mxu0 %v487_v3  ;;  %624 = vmatpush.msra.mxu3 %v487_v3 }
  0x93   :  { %v280_v7 = vadd.f32 %v587_v4, %v224_v6  ;;  %v486_v4 = vld [vmem:[#allocation2 + $0x28] sm:$0xff] }
  0x94   :  { %511 = vmatpush.msrb.mxu0 %v486_v4  ;;  %625 = vmatpush.msra.mxu3 %v486_v4 }
  0x96   :  { %608 = vmatmul.msk.f32.gmra.mxu2 %vm288_vm0, %v280_v7  ;;  %v484_v7 = vld [vmem:[#allocation2 + $0x18] sm:$0xff]  ;;  %512 = vmatpush.msrb.mxu0 %v485_v5 }
  0x97   :  { %v136_v18 = vpop.permute.xlu0 %135  ;;  %626 = vmatpush.msra.mxu3 %v485_v5 }
  0x98   :  { %v133_v10 = vpop.permute.xlu1 %132  ;;  %vm149_vm14 = vcmp.eq.s32.totalorder %v869_v48, %v136_v18  ;;  %513 = vmatpush.msrb.mxu0 %v484_v7  ;;  %v481_v18 = vld [vmem:[#allocation2] sm:$0xff] }
  0x99   :  { %vm148_vm10 = vcmp.eq.s32.totalorder %v869_v48, %v133_v10  ;;  %v575_v24 = vsel %vm149_vm14, 1.0, %v727_v50  ;;  %v139_v31 = vpop.permute.xlu2 %138  ;;  %627 = vmatpush.msra.mxu3 %v484_v7 }
  0x9a   :  { %v574_v11 = vsel %vm148_vm10, 1.0, %v727_v50  ;;  %v170_v26 = vadd.f32 %v575_v24, %v568_v23  ;;  %vm150_vm2 = vcmp.eq.s32.totalorder %v869_v48, %v139_v31 }
  0x9b   :  { %v169_v14 = vadd.f32 %v574_v11, %v567_v12  ;;  %v576_v35 = vsel %vm150_vm2, 1.0, %v727_v50 }
  0x9d   :  { %v225_v17 = vadd.f32 %v581_v15, %v169_v14 }
  0xa0   :  { %v195_v34 = vpop.permute.xlu0 %194 }
  0xa1   :  { %v245_v16 = vpop.permute.xlu1 %244  ;;  %vm206_vm4 = vcmp.eq.s32.totalorder %v869_v48, %v195_v34 }
  0xa2   :  { %vm260_vm12 = vcmp.eq.s32.totalorder %v869_v48, %v245_v16  ;;  %v86_v37 = vpop.permute.xlu2 %85  ;;  %v583_v39 = vsel %vm206_vm4, 1.0, %v727_v50  ;;  %v483_v16 = vld [vmem:[#allocation2 + $0x10] sm:$0xff] }
  0xa3   :  { %v588_v19 = vsel %vm260_vm12, 1.0, %v727_v50  ;;  %vm95_vm6 = vcmp.eq.s32.totalorder %v869_v48, %v86_v37  ;;  %514 = vmatpush.msrb.mxu0 %v483_v16  ;;  %628 = vmatpush.msra.mxu3 %v483_v16 }
  0xa4   :  { %v281_v20 = vadd.f32 %v588_v19, %v225_v17  ;;  %v570_v55 = vsel %vm95_vm6, 1.0, %v727_v50  ;;  %v482_v17 = vld [vmem:[#allocation2 + $0x8] sm:$0xff]  ;;  %v345_v19 = vpop.f32.mrf.mxu1 }
  0xa5   :  { %515 = vmatpush.msrb.mxu0 %v482_v17  ;;  %629 = vmatpush.msra.mxu3 %v482_v17 }
  0xa6   :  { %609 = vmatmul.msk.f32.gmra.mxu2 %vm288_vm0, %v281_v20 }
  0xa7   :  { %516 = vmatpush.msrb.mxu0 %v481_v18  ;;  %630 = vmatpush.msra.mxu3 %v481_v18 }
  0xa9   :  { %v254_v51 = vpop.permute.xlu0 %253 }
  0xaa   :  { %v192_v25 = vpop.permute.xlu1 %191  ;;  %vm263_vm9 = vcmp.eq.s32.totalorder %v869_v48, %v254_v51 }
  0xab   :  { %vm205_vm1 = vcmp.eq.s32.totalorder %v869_v48, %v192_v25  ;;  %v198_v47 = vpop.permute.xlu2 %197  ;;  %v591_v60 = vsel %vm263_vm9, 1.0, %v727_v50 }
  0xac   :  { %v582_v27 = vsel %vm205_vm1, 1.0, %v727_v50  ;;  %vm207_vm7 = vcmp.eq.s32.totalorder %v869_v48, %v198_v47  ;;  %v386_v20 = vpop.f32.mrf.mxu1 }
  0xad   :  { %v226_v29 = vadd.f32 %v582_v27, %v170_v26  ;;  %v584_v57 = vsel %vm207_vm7, 1.0, %v727_v50 }
  0xaf   :  { %v282_v30 = vadd.f32 %v589_v28, %v226_v29 }
  0xb1   :  { %610 = vmatmul.msk.f32.gmra.mxu2 %vm288_vm0, %v282_v30 }
  0xb3   :  { %v83_v33 = vpop.permute.xlu1 %82 }
  0xb4   :  { %vm94_vm3 = vcmp.eq.s32.totalorder %v869_v48, %v83_v33  ;;  %v145_v63 = vpop.permute.xlu2 %144  ;;  %v389_v25 = vpop.f32.mrf.mxu1 }
  0xb5   :  { %v569_v36 = vsel %vm94_vm3, 1.0, %v727_v50  ;;  %vm152_vm10 = vcmp.eq.s32.totalorder %v869_v48, %v145_v63 }
  0xb6   :  { %v171_v38 = vadd.f32 %v576_v35, %v569_v36  ;;  %v578_v8 = vsel %vm152_vm10, 1.0, %v727_v50 }
  0xb8   :  { %v227_v41 = vadd.f32 %v583_v39, %v171_v38 }
  0xbc   :  { %v251_v40 = vpop.permute.xlu1 %250  ;;  %v392_v31 = vpop.f32.mrf.mxu1 }
  0xbd   :  { %vm262_vm5 = vcmp.eq.s32.totalorder %v869_v48, %v251_v40  ;;  %v257_v6 = vpop.permute.xlu2 %256 }
  0xbe   :  { %v590_v42 = vsel %vm262_vm5, 1.0, %v727_v50  ;;  %vm264_vm12 = vcmp.eq.s32.totalorder %v869_v48, %v257_v6 }
  0xbf   :  { %v283_v45 = vadd.f32 %v590_v42, %v227_v41  ;;  %v592_v13 = vsel %vm264_vm12, 1.0, %v727_v50 }
  0xc1   :  { %611 = vmatmul.msk.f32.gmra.mxu2 %vm288_vm0, %v283_v45 }
  0xc4   :  { %v395_v37 = vpop.f32.mrf.mxu1 }
  0xc5   :  { %v142_v53 = vpop.permute.xlu1 %141 }
  0xc6   :  { %vm151_vm8 = vcmp.eq.s32.totalorder %v869_v48, %v142_v53 }
  0xc7   :  { %v577_v56 = vsel %vm151_vm8, 1.0, %v727_v50 }
  0xc8   :  { %v172_v58 = vadd.f32 %v577_v56, %v570_v55 }
  0xca   :  { %v228_v61 = vadd.f32 %v584_v57, %v172_v58 }
  0xcc   :  { %v284_v0 = vadd.f32 %v591_v60, %v228_v61  ;;  %v398_v43 = vpop.f32.mrf.mxu1  ;;  %v667_v61 = vld [vmem:[%s974_s7] ss:$0 sm:$0xff]  ;;  %s550_s7 = sshll.u32 %s728_s6, 4  ;;  %s551_s7 = int_to_ptr.vmem [resolvable:$true] %s550_s7 }
  0xce   :  { %v89_v2 = vpop.permute.xlu1 %88  ;;  %612 = vmatmul.msk.f32.gmra.mxu2 %vm288_vm0, %v284_v0 }
  0xcf   :  { %vm96_vm11 = vcmp.eq.s32.totalorder %v869_v48, %v89_v2 }
  0xd0   :  { %v571_v9 = vsel %vm96_vm11, 1.0, %v727_v50 }
  0xd1   :  { %v173_v11 = vadd.f32 %v578_v8, %v571_v9 }
  0xd4   :  { %v401_v51 = vpop.f32.mrf.mxu1 }
  0xd7   :  { %v201_v10 = vpop.permute.xlu1 %200 }
  0xd8   :  { %vm208_vm13 = vcmp.eq.s32.totalorder %v869_v48, %v201_v10  ;;  %v327_v48 = vpop.f32.mrf.mxu0 }
  0xd9   :  { %v585_v12 = vsel %vm208_vm13, 1.0, %v727_v50  ;;  %v387_v21 = vadd.f32 %v386_v20, %v327_v48 }
  0xda   :  { %v229_v14 = vadd.f32 %v585_v12, %v173_v11 }
  0xdc   :  { %v285_v15 = vadd.f32 %v592_v13, %v229_v14  ;;  %v404_v56 = vpop.f32.mrf.mxu1 }
  0xdd   :  { %v405_v57 = vadd.f32 %v404_v56, %v345_v19 }
  0xde   :  { %613 = vmatmul.msk.f32.gmra.mxu2 %vm288_vm0, %v285_v15 }
  0xe0   :  { %v330_v50 = vpop.f32.mrf.mxu0 }
  0xe1   :  { %v390_v26 = vadd.f32 %v389_v25, %v330_v50 }
  0xe8   :  { %v333_v30 = vpop.f32.mrf.mxu0 }
  0xe9   :  { %v393_v32 = vadd.f32 %v392_v31, %v333_v30 }
  0xf0   :  { %v336_v36 = vpop.f32.mrf.mxu0 }
  0xf1   :  { %v396_v38 = vadd.f32 %v395_v37, %v336_v36 }
  0xf8   :  { %v339_v42 = vpop.f32.mrf.mxu0 }
  0xf9   :  { %v399_v44 = vadd.f32 %v398_v43, %v339_v42 }
 0x100   :  { %v342_v49 = vpop.f32.mrf.mxu0 }
 0x101   :  { %v402_v52 = vadd.f32 %v401_v51, %v342_v49 }
 0x111   :  { %v446_v22 = vpop.f32.mrf.mxu2 }
 0x112   :  { %v467_v23 = vadd.f32 %v446_v22, %v387_v21 }
 0x114   :  { %v474_v24 = vmax.f32 %v467_v23, 0.0 }
 0x116   :  { %517 = vmatmul.f32.vlgmr.msrb.gmra.mxu0 %v474_v24 }
 0x119   :  { %v449_v27 = vpop.f32.mrf.mxu2 }
 0x11a   :  { %v468_v28 = vadd.f32 %v449_v27, %v390_v26 }
 0x11c   :  { %v475_v29 = vmax.f32 %v468_v28, 0.0 }
 0x11e   :  { %520 = vmatmul.f32.gmra.mxu0 %v475_v29 }
 0x129   :  { %v452_v33 = vpop.f32.mrf.mxu2 }
 0x12a   :  { %v469_v34 = vadd.f32 %v452_v33, %v393_v32 }
 0x12c   :  { %v476_v35 = vmax.f32 %v469_v34, 0.0 }
 0x12e   :  { %523 = vmatmul.f32.vlgmr.msra.gmra.mxu3 %v476_v35 }
 0x134   :  { %v455_v39 = vpop.f32.mrf.mxu2 }
 0x135   :  { %v470_v40 = vadd.f32 %v455_v39, %v396_v38 }
 0x137   :  { %v477_v41 = vmax.f32 %v470_v40, 0.0 }
 0x139   :  { %526 = vmatmul.f32.gmra.mxu3 %v477_v41 }
 0x144   :  { %v458_v45 = vpop.f32.mrf.mxu2 }
 0x145   :  { %v471_v46 = vadd.f32 %v458_v45, %v399_v44 }
 0x147   :  { %v478_v47 = vmax.f32 %v471_v46, 0.0 }
 0x149   :  { %529 = vmatmul.f32.gmra.mxu3 %v478_v47 }
 0x151   :  { %v461_v53 = vpop.f32.mrf.mxu2 }
 0x152   :  { %v472_v54 = vadd.f32 %v461_v53, %v402_v52 }
 0x154   :  { %v479_v55 = vmax.f32 %v472_v54, 0.0 }
 0x156   :  { %532 = vmatmul.f32.gmra.mxu3 %v479_v55 }
 0x161   :  { %v464_v58 = vpop.f32.mrf.mxu2 }
 0x162   :  { %v473_v59 = vadd.f32 %v464_v58, %v405_v57 }
 0x164   :  { %v480_v60 = vmax.f32 %v473_v59, 0.0 }
 0x166   :  { %535 = vmatmul.f32.gmra.mxu3 %v480_v60 }
 0x193   :  { %v518_v62 = vpop.f32.mrf.mxu0 }
 0x194   :  { %v519_v63 = vadd.f32 %v667_v61, %v518_v62 }
 0x196   :  { %539 = vst [vmem:[#allocation5] sm:$0xff] %v519_v63 }
 0x19b   :  { %v521_v0 = vpop.f32.mrf.mxu0 }
 0x19c   :  { %v522_v1 = vadd.f32 %v667_v61, %v521_v0 }
 0x19e   :  { %540 = vst [vmem:[#allocation5 + $0x8] sm:$0xff] %v522_v1 }
 0x1b1   :  { %v524_v2 = vpop.f32.mrf.mxu3 }
 0x1b2   :  { %v525_v3 = vadd.f32 %v667_v61, %v524_v2 }
 0x1b4   :  { %541 = vst [vmem:[#allocation5 + $0x10] sm:$0xff] %v525_v3 }
 0x1bc   :  { %v527_v4 = vpop.f32.mrf.mxu3 }
 0x1bd   :  { %v528_v5 = vadd.f32 %v667_v61, %v527_v4 }
 0x1bf   :  { %542 = vst [vmem:[#allocation5 + $0x18] sm:$0xff] %v528_v5 }
 0x1cc   :  { %v530_v6 = vpop.f32.mrf.mxu3 }
 0x1cd   :  { %v531_v7 = vadd.f32 %v667_v61, %v530_v6 }
 0x1cf   :  { %543 = vst [vmem:[#allocation5 + $0x20] sm:$0xff] %v531_v7 }
 0x1d9   :  { %v533_v8 = vpop.f32.mrf.mxu3 }
 0x1da   :  { %v534_v9 = vadd.f32 %v667_v61, %v533_v8 }
 0x1dc   :  { %544 = vst [vmem:[#allocation5 + $0x28] sm:$0xff] %v534_v9 }
 0x1e9   :  { %v536_v10 = vpop.f32.mrf.mxu3 }
 0x1ea   :  { %v537_v11 = vadd.f32 %v667_v61, %v536_v10 }
 0x1ec   :  { %545 = vst [vmem:[#allocation5 + $0x30] sm:$0xff] %v537_v11 }
 0x1ed   :  { %558 = dma.vmem_to_hbm [thread:$0]  %s551_s7, 896, %s553_s13, [#allocation4], %s721_s10, %s721_s10, %s722_s11  }
 0x1ee   :  { %718 = dma.done.wait [#allocation4], 896  }
 0x1ef   :  { %719 = vsyncadd [#allocation4], 4294966400 }
 0x1f0   :  { %563 = vsyncpa [#allocation3], 1 }
 0x1f1   :  { %564 = vsyncpa [#allocation4], 1 }

</bundles_post_ra>
